<compile_context>
chip_gen: v6e
topology: v6e:2x2x1
jax: 0.10.0
libtpu: 0.0.40
codegen_flags: <defaults>
</compile_context>

<pallas_src>
import math

import jax
import jax.numpy as jnp
from jax.experimental import pallas as pl
from jax.experimental.pallas import tpu as pltpu


def _choose_row_tile(n_rows, row_bytes, target_bytes=512 * 1024, min_steps=2):
    """Rows per block: big enough to amortize per-step overhead, small enough
    to double-buffer comfortably, and split into >= min_steps blocks when the
    batch is large enough so both v7x TensorCores get work.  The returned tile
    is either the full batch or a multiple of 8 (sublane constraint)."""
    tb = max(1, target_bytes // max(row_bytes, 1))
    if n_rows >= min_steps * 8:
        tb = min(tb, n_rows // min_steps)
    if tb >= n_rows:
        return n_rows
    return min(n_rows, max(8, (tb // 8) * 8))


def _make_rsoftmax_kernel(radix, cardinality, rest):
    """Softmax over the radix axis of a (TB, cardinality*radix*rest) block.

    Input block columns are ordered (cardinality, radix, rest); output block
    columns are ordered (radix, cardinality, rest) — the PyTorch
    transpose(1, 2) is folded into the static column offsets below."""

    def kernel(x_ref, o_ref):
        for c in range(cardinality):  # static unroll; cardinality*radix is small
            # Radix logit chunks of this cardinality group (static column slices).
            xs = [
                x_ref[:, pl.ds((c * radix + r) * rest, rest)].astype(jnp.float32)
                for r in range(radix)
            ]
            if radix == 2:
                # softmax([a, b]) == [sigmoid(a-b), sigmoid(b-a)] — numerically
                # stable, one exp + one reciprocal on the EUP.
                d = xs[0] - xs[1]
                p0 = 1.0 / (1.0 + jnp.exp(-d))
                ps = [p0, 1.0 - p0]
            else:
                # Numerically stable softmax across the radix chunks:
                # pure elementwise VPU max/add between (TB, rest) tiles.
                m = xs[0]
                for t in xs[1:]:
                    m = jnp.maximum(m, t)
                es = [jnp.exp(t - m) for t in xs]
                s = es[0]
                for t in es[1:]:
                    s = s + t
                inv = pl.reciprocal(s, approx=False)
                ps = [e * inv for e in es]
            for r in range(radix):
                o_ref[:, pl.ds((r * cardinality + c) * rest, rest)] = ps[r].astype(
                    o_ref.dtype
                )

    return kernel


def _sigmoid_kernel(x_ref, o_ref):
    x = x_ref[...].astype(jnp.float32)
    o_ref[...] = (1.0 / (1.0 + jnp.exp(-x))).astype(o_ref.dtype)


def rsoftmax(x, radix, cardinality):
    """Pallas implementation of rSoftMax.forward.

    x: (B, C, H, W) array (NCHW).
    Returns (B, C*H*W) if radix > 1, else sigmoid(x) with the input shape.
    """
    B = x.shape[0]
    total = math.prod(x.shape[1:])
    x2 = x.reshape(B, total)                      # free reshape (row-major)
    row_bytes = total * x2.dtype.itemsize
    tb = _choose_row_tile(B, row_bytes)
    grid = (pl.cdiv(B, tb),)
    compiler_params = pltpu.CompilerParams(dimension_semantics=("parallel",))

    if radix > 1:
        assert total % (cardinality * radix) == 0
        rest = total // (cardinality * radix)
        out = pl.pallas_call(
            _make_rsoftmax_kernel(radix, cardinality, rest),
            out_shape=jax.ShapeDtypeStruct((B, total), x.dtype),
            grid=grid,
            in_specs=[pl.BlockSpec((tb, total), lambda i: (i, 0))],
            out_specs=pl.BlockSpec((tb, total), lambda i: (i, 0)),
            compiler_params=compiler_params,
        )(x2)
        return out                                 # (B, total), matches reshape(batch, -1)
    else:
        out = pl.pallas_call(
            _sigmoid_kernel,
            out_shape=jax.ShapeDtypeStruct((B, total), x.dtype),
            grid=grid,
            in_specs=[pl.BlockSpec((tb, total), lambda i: (i, 0))],
            out_specs=pl.BlockSpec((tb, total), lambda i: (i, 0)),
            compiler_params=compiler_params,
        )(x2)
        return out.reshape(x.shape)


def _rsoftmax_ref(x, radix, cardinality):
    """Pure-JAX reference mirroring the PyTorch module exactly."""
    B = x.shape[0]
    if radix > 1:
        xr = x.reshape(B, cardinality, radix, -1)
        xr = jnp.swapaxes(xr, 1, 2)
        xr = jax.nn.softmax(xr, axis=1)
        return xr.reshape(B, -1)
    else:
        return jax.nn.sigmoid(x)


if __name__ == "__main__":
    key = jax.random.PRNGKey(0)
    k1, k2, k3, k4 = jax.random.split(key, 4)

    # Case 1: radix=2, cardinality=2 — exercises the folded radix<->cardinality
    # permutation and the radix==2 sigmoid fast path.
    radix, cardinality, rest = 2, 2, 128
    B, C = 8, radix * cardinality * rest
    x = jax.random.normal(k1, (B, C, 1, 1), dtype=jnp.float32)
    out = jax.block_until_ready(rsoftmax(x, radix, cardinality))
    ref = _rsoftmax_ref(x, radix, cardinality)
    assert out.shape == (B, C)
    assert jnp.allclose(out, ref, atol=1e-5, rtol=1e-5)

    # Case 2: radix=2, cardinality=1 — standard ResNeSt config, bf16 input,
    # batch large enough to split the grid across v7x TensorCores.
    radix2, card2, rest2 = 2, 1, 256
    B2, C2 = 32, radix2 * card2 * rest2
    xb = jax.random.normal(k2, (B2, C2, 1, 1), dtype=jnp.bfloat16)
    outb = jax.block_until_ready(rsoftmax(xb, radix2, card2))
    refb = _rsoftmax_ref(xb.astype(jnp.float32), radix2, card2)
    assert outb.shape == (B2, C2)
    assert outb.dtype == jnp.bfloat16
    assert jnp.allclose(outb.astype(jnp.float32), refb, atol=1e-2, rtol=1e-2)

    # Case 3: radix=4, cardinality=2 — exercises the generic unrolled softmax path.
    radix3, card3, rest3 = 4, 2, 128
    B3, C3 = 8, radix3 * card3 * rest3
    xc = jax.random.normal(k3, (B3, C3, 1, 1), dtype=jnp.float32)
    outc = jax.block_until_ready(rsoftmax(xc, radix3, card3))
    refc = _rsoftmax_ref(xc, radix3, card3)
    assert outc.shape == (B3, C3)
    assert jnp.allclose(outc, refc, atol=1e-5, rtol=1e-5)

    # Case 4: radix == 1 — sigmoid path, shape preserved.
    x1 = jax.random.normal(k4, (4, 256, 1, 1), dtype=jnp.float32)
    out1 = jax.block_until_ready(rsoftmax(x1, 1, cardinality))
    ref1 = _rsoftmax_ref(x1, 1, cardinality)
    assert out1.shape == x1.shape
    assert jnp.allclose(out1, ref1, atol=1e-5, rtol=1e-5)

    print("KERNEL_OK")
</pallas_src>

<mosaic_0001>
module attributes {stable_mosaic.version = 11 : i64} {
  func.func @kernel(%arg0: i32, %arg1: memref<8x512xf32, #tpu.memory_space<vmem>>, %arg2: memref<8x512xf32, #tpu.memory_space<vmem>>) attributes {dimension_semantics = [#tpu.dimension_semantics<parallel>], iteration_bounds = array<i64: 1>, scalar_prefetch = 0 : i64, scratch_operands = 0 : i64, tpu.core_type = #tpu.core_type<tc>, window_params = [{transform_indices = @transform_0, window_bounds = array<i64: 8, 512>}, {transform_indices = @transform_1, window_bounds = array<i64: 8, 512>}]} {
    %c0 = arith.constant 0 : index
    %c0_0 = arith.constant 0 : index
    %0 = vector.load %arg1[%c0, %c0_0] : memref<8x512xf32, #tpu.memory_space<vmem>>, vector<8x128xf32>
    %c0_1 = arith.constant 0 : index
    %c128 = arith.constant 128 : index
    %1 = vector.load %arg1[%c0_1, %c128] : memref<8x512xf32, #tpu.memory_space<vmem>>, vector<8x128xf32>
    %2 = arith.subf %0, %1 : vector<8x128xf32>
    %cst = arith.constant 0.000000e+00 : f32
    %3 = vector.broadcast %cst : f32 to vector<8x128xf32>
    %4 = arith.subf %3, %2 : vector<8x128xf32>
    %5 = math.exp %4 : vector<8x128xf32>
    %cst_2 = arith.constant 1.000000e+00 : f32
    %6 = vector.broadcast %cst_2 : f32 to vector<8x128xf32>
    %7 = arith.addf %6, %5 : vector<8x128xf32>
    %cst_3 = arith.constant 1.000000e+00 : f32
    %8 = vector.broadcast %cst_3 : f32 to vector<8x128xf32>
    %9 = arith.divf %8, %7 : vector<8x128xf32>
    %cst_4 = arith.constant 1.000000e+00 : f32
    %10 = vector.broadcast %cst_4 : f32 to vector<8x128xf32>
    %11 = arith.subf %10, %9 : vector<8x128xf32>
    %c0_5 = arith.constant 0 : index
    %c0_6 = arith.constant 0 : index
    %12 = vector.load %arg2[%c0_5, %c0_6] : memref<8x512xf32, #tpu.memory_space<vmem>>, vector<8x128xf32>
    tpu.vector_store %arg2[%c0_5, %c0_6], %9 {strides = array<i32>} : memref<8x512xf32, #tpu.memory_space<vmem>>, vector<8x128xf32>,
    %c0_7 = arith.constant 0 : index
    %c256 = arith.constant 256 : index
    %13 = vector.load %arg2[%c0_7, %c256] : memref<8x512xf32, #tpu.memory_space<vmem>>, vector<8x128xf32>
    tpu.vector_store %arg2[%c0_7, %c256], %11 {strides = array<i32>} : memref<8x512xf32, #tpu.memory_space<vmem>>, vector<8x128xf32>,
    %c0_8 = arith.constant 0 : index
    %c256_9 = arith.constant 256 : index
    %14 = vector.load %arg1[%c0_8, %c256_9] : memref<8x512xf32, #tpu.memory_space<vmem>>, vector<8x128xf32>
    %c0_10 = arith.constant 0 : index
    %c384 = arith.constant 384 : index
    %15 = vector.load %arg1[%c0_10, %c384] : memref<8x512xf32, #tpu.memory_space<vmem>>, vector<8x128xf32>
    %16 = arith.subf %14, %15 : vector<8x128xf32>
    %cst_11 = arith.constant 0.000000e+00 : f32
    %17 = vector.broadcast %cst_11 : f32 to vector<8x128xf32>
    %18 = arith.subf %17, %16 : vector<8x128xf32>
    %19 = math.exp %18 : vector<8x128xf32>
    %cst_12 = arith.constant 1.000000e+00 : f32
    %20 = vector.broadcast %cst_12 : f32 to vector<8x128xf32>
    %21 = arith.addf %20, %19 : vector<8x128xf32>
    %cst_13 = arith.constant 1.000000e+00 : f32
    %22 = vector.broadcast %cst_13 : f32 to vector<8x128xf32>
    %23 = arith.divf %22, %21 : vector<8x128xf32>
    %cst_14 = arith.constant 1.000000e+00 : f32
    %24 = vector.broadcast %cst_14 : f32 to vector<8x128xf32>
    %25 = arith.subf %24, %23 : vector<8x128xf32>
    %c0_15 = arith.constant 0 : index
    %c128_16 = arith.constant 128 : index
    %26 = vector.load %arg2[%c0_15, %c128_16] : memref<8x512xf32, #tpu.memory_space<vmem>>, vector<8x128xf32>
    tpu.vector_store %arg2[%c0_15, %c128_16], %23 {strides = array<i32>} : memref<8x512xf32, #tpu.memory_space<vmem>>, vector<8x128xf32>,
    %c0_17 = arith.constant 0 : index
    %c384_18 = arith.constant 384 : index
    %27 = vector.load %arg2[%c0_17, %c384_18] : memref<8x512xf32, #tpu.memory_space<vmem>>, vector<8x128xf32>
    tpu.vector_store %arg2[%c0_17, %c384_18], %25 {strides = array<i32>} : memref<8x512xf32, #tpu.memory_space<vmem>>, vector<8x128xf32>,
    return
  }
  func.func @transform_0(%arg0: i32) -> (i32, i32) {
    %c0_i32 = arith.constant 0 : i32
    %c0_i32_0 = arith.constant 0 : i32
    return %arg0, %c0_i32 : i32, i32
  }
  func.func @transform_1(%arg0: i32) -> (i32, i32) {
    %c0_i32 = arith.constant 0 : i32
    %c0_i32_0 = arith.constant 0 : i32
    return %arg0, %c0_i32 : i32, i32
  }
}

</mosaic_0001>

<bundles_post_ra>
// kernel: tpu_custom_call.1
= control target key start
LH: loop header
LB: loop body
LE: loop exit
PB: predicated region body
PF: predicated region fallthrough
CT: control target
= control target key end

     0   :  { %6 = vsyncpa [#allocation3], 0  ;;  %s132_s0 = inlined_call_operand.hbm [shape: f32[8,512], index: 0, kind: input, shape index: {}]   ;;  %s133_s1 = inlined_call_operand.hbm [shape: f32[8,512], index: 1, kind: output, shape index: {}]  }
   0x1   :  { %7 = vsyncpa [#allocation4], 0  ;;  %s114_s6 = smov [#allocation2]  }
   0x2   :  { %s14_s7 = sshll.u32 %s114_s6, 4  ;;  %s15_s7 = int_to_ptr.vmem [resolvable:$true] %s14_s7 }
   0x3   :  { %s78_s8 = scalar_lea.vmem %s15_s7, 512  ;;  %p83_p1 = scmp.lt.s32.totalorder %s15_s7, %s15_s7 }
   0x4   :  { %p79_p0 = scmp.ne.s32.totalorder %s15_s7, %s78_s8  ;;  %p84_p2 = scmp.lt.s32.totalorder %s78_s8, %s78_s8 }
   0x6   :  { %p85_p3 = por %p84_p2, %p83_p1 }
   0x8   :  { %p86_p4 = pnand %p85_p3, %p79_p0 }
   0xa   :  { %89 = shalt.err (!%p86_p4)
}
   0xb   :  { %17 = dma.hbm_to_vmem [thread:$0]  %s132_s0, 512, %s15_s7, [#allocation3]  }
   0xc   :  { %110 = dma.done.wait [#allocation3], 512  }
   0xd   :  { %111 = vsyncadd [#allocation3], 4294966784  ;;  %v21_v0 = vld [vmem:[#allocation2] sm:$0xff]  ;;  %v22_v1 = vld [vmem:[#allocation2 + $0x8] sm:$0xff]  ;;  %s115_s0 = smov [#allocation5]  }
   0xe   :  { %v33_v2 = vld [vmem:[#allocation2 + $0x10] sm:$0xff]  ;;  %v23_v3 = vsub.f32 %v21_v0, %v22_v1  ;;  %v34_v4 = vld [vmem:[#allocation2 + $0x18] sm:$0xff]  ;;  %s51_s11 = sshll.u32 %s115_s0, 4  ;;  %s52_s11 = int_to_ptr.vmem [resolvable:$true] %s51_s11 }
   0xf   :  { %v35_v5 = vsub.f32 %v33_v2, %v34_v4  ;;  %s90_s12 = scalar_lea.vmem %s52_s11, 512  ;;  %p95_p6 = scmp.lt.s32.totalorder %s52_s11, %s52_s11 }
  0x10   :  { %v24_v6 = vsub.f32 0.0, %v23_v3  ;;  %p91_p5 = scmp.ne.s32.totalorder %s52_s11, %s90_s12  ;;  %p96_p7 = scmp.lt.s32.totalorder %s90_s12, %s90_s12 }
  0x11   :  { %v36_v7 = vsub.f32 0.0, %v35_v5 }
  0x12   :  { %v25_v8 = vmul.f32 1.442695, %v24_v6  ;;  %p97_p8 = por %p96_p7, %p95_p6 }
  0x13   :  { %v37_v9 = vmul.f32 1.442695, %v36_v7 }
  0x14   :  { %62 = vpow2.f32 %v25_v8  ;;  %p98_p9 = pnand %p97_p8, %p91_p5 }
  0x15   :  { %64 = vpow2.f32 %v37_v9 }
  0x21   :  { %v63_v10 = vpop.eup %62 }
  0x22   :  { %v65_v11 = vpop.eup %64  ;;  %v27_v12 = vadd.f32 1.0, %v63_v10 }
  0x23   :  { %v39_v13 = vadd.f32 1.0, %v65_v11 }
  0x24   :  { %66 = vrcp.f32 %v27_v12 }
  0x25   :  { %68 = vrcp.f32 %v39_v13 }
  0x31   :  { %v67_v14 = vpop.eup %66 }
  0x32   :  { %v69_v15 = vpop.eup %68  ;;  %31 = vst [vmem:[#allocation5] sm:$0xff] %v67_v14  ;;  %v30_v16 = vsub.f32 1.0, %v67_v14 }
  0x33   :  { %43 = vst [vmem:[#allocation5 + $0x8] sm:$0xff] %v69_v15  ;;  %v42_v17 = vsub.f32 1.0, %v69_v15 }
  0x34   :  { %32 = vst [vmem:[#allocation5 + $0x10] sm:$0xff] %v30_v16 }
  0x35   :  { %44 = vst [vmem:[#allocation5 + $0x18] sm:$0xff] %v42_v17 }
  0x36   :  { %101 = shalt.err (!%p98_p9)
}
  0x37   :  { %54 = dma.vmem_to_hbm [thread:$0]  %s52_s11, 512, %s133_s1, [#allocation4]  }
  0x38   :  { %112 = dma.done.wait [#allocation4], 512  }
  0x39   :  { %113 = vsyncadd [#allocation4], 4294966784 }
  0x3a   :  { %58 = vsyncpa [#allocation3], 1 }
  0x3b   :  { %59 = vsyncpa [#allocation4], 1 }

</bundles_post_ra>
